<compile_context>
chip_gen: v6e
topology: v6e:2x2x1
jax: 0.10.0
libtpu: 0.0.40
codegen_flags: <defaults>
</compile_context>

<pallas_src>
import functools

import jax
import jax.numpy as jnp
from jax.experimental import pallas as pl
from jax.experimental.pallas import tpu as pltpu


_NEG_BIG = -1e30  # large-negative fill: exp() underflows to 0, no inf-inf NaNs


def _infonce_kernel(scale_ref, pos_dist_ref, ref_ref, negT_ref, bias_ref,
                    align_ref, uniform_ref,
                    rs_scratch, m_scratch, l_scratch, *, has_m_padding):
    j = pl.program_id(1)

    @pl.when(j == 0)
    def _init():
        m_scratch[...] = jnp.full(m_scratch.shape, _NEG_BIG, jnp.float32)
        l_scratch[...] = jnp.zeros(l_scratch.shape, jnp.float32)
        # Hoisted out of the M loop: scale ref by 1/T once per row block and keep
        # it resident in a single-buffered VMEM scratch (in the matmul dtype).
        inv_t = scale_ref[0]
        r32 = ref_ref[...].astype(jnp.float32)
        rs_scratch[...] = (r32 * inv_t).astype(rs_scratch.dtype)

    # NN matmul on the MXU: (tn, d_pad) @ (d_pad, tm) -> f32 (tn, tm).
    s = jnp.dot(rs_scratch[...], negT_ref[...],
                preferred_element_type=jnp.float32)

    if has_m_padding:
        # Padded negative columns get a -1e30 bias so they never reach the
        # max / logsumexp.  Single VPU add, emitted only when padding exists.
        s = s + bias_ref[...]

    # Online max / sum-exp accumulation over the M (reduction) grid axis.
    m_prev = m_scratch[...]
    m_new = jnp.maximum(m_prev, jnp.max(s, axis=-1, keepdims=True))
    alpha = jnp.exp(m_prev - m_new)
    p = jnp.exp(s - m_new)
    l_scratch[...] = alpha * l_scratch[...] + jnp.sum(p, axis=-1, keepdims=True)
    m_scratch[...] = m_new

    @pl.when(j == pl.num_programs(1) - 1)
    def _finalize():
        c = m_scratch[...]                          # c == rowwise max of neg_dist
        align_ref[...] = c - pos_dist_ref[...]      # -(pos_dist - c)
        uniform_ref[...] = jnp.log(l_scratch[...])  # logsumexp(neg_dist - c)


def _round_up(x, m):
    return (x + m - 1) // m * m


def infonce_pallas(ref, pos, neg, temperature: float = 1.0,
                   *, block_n: int = 512, block_m: int = 256,
                   matmul_dtype=None, vmem_budget_bytes: int = 40 << 20):
    """Returns (loss, align, uniform), matching ReferenceInfoNCE.forward."""
    N, D = ref.shape
    M, _ = neg.shape

    compute_dtype = jnp.dtype(matmul_dtype) if matmul_dtype is not None \
        else jnp.dtype(ref.dtype)
    isz = compute_dtype.itemsize
    sub = {4: 8, 2: 16, 1: 32}.get(isz, 8)          # sublane multiple per dtype

    d_pad = _round_up(D, 128)                       # lane-dense contraction dim

    # --- tile selection against an explicit VMEM budget -----------------------
    tn = min(_round_up(block_n, sub), _round_up(N, sub))
    tm = min(_round_up(block_m, 128), _round_up(M, 128))

    def _vmem_bytes(tn_, tm_):
        return (2 * tn_ * d_pad * isz          # ref tile, double-buffered
                + 2 * d_pad * tm_ * isz        # neg^T tile, double-buffered
                + tn_ * d_pad * isz            # scaled-ref scratch
                + 2 * tn_ * 4 + 2 * tm_ * 4    # pos_dist + bias tiles
                + 4 * tn_ * 4                  # two (tn, 1) outputs
                + 2 * tn_ * 4                  # m / l scratch
                + 2 * tn_ * tm_ * 4)           # s / p f32 intermediates

    while _vmem_bytes(tn, tm) > vmem_budget_bytes and tm > 256:
        tm = max(256, _round_up(tm // 2, 128))
    while _vmem_bytes(tn, tm) > vmem_budget_bytes and tn > sub:
        tn = max(sub, _round_up(tn // 2, sub))

    # v7x megacore: give the "parallel" N axis at least 2 tiles when that does
    # not push the row tile below MXU-friendly sizes for large N.
    if _round_up(N, tn) // tn < 2 and N >= 2 * sub:
        tn_half = _round_up(-(-N // 2), sub)
        if N < 256 or tn_half >= 256:
            tn = tn_half

    n_pad = _round_up(N, tn)
    m_pad = _round_up(M, tm)
    has_m_padding = (m_pad != M)

    # --- wrapper-side prep ------------------------------------------------------
    inv_t = 1.0 / float(temperature)

    # pos only contributes to pos_dist; compute it once in f32 in the wrapper so
    # pos never occupies a pipelined VMEM slab inside the kernel.
    pos_dist = jnp.sum(ref.astype(jnp.float32) * pos.astype(jnp.float32),
                       axis=-1) / temperature
    pos_dist_p = jnp.pad(pos_dist, (0, n_pad - N)).reshape(n_pad, 1)

    ref_p = jnp.pad(ref, ((0, n_pad - N), (0, d_pad - D)))
    neg_p = jnp.pad(neg, ((0, m_pad - M), (0, d_pad - D)))
    if matmul_dtype is not None:
        ref_p = ref_p.astype(compute_dtype)
        neg_p = neg_p.astype(compute_dtype)
    negT = neg_p.T                                   # one-time (d_pad, m_pad) layout

    # Additive column bias: 0 on real columns, -1e30 on padded columns.
    col_bias = jnp.where(jnp.arange(m_pad) < M, 0.0, _NEG_BIG) \
                  .astype(jnp.float32).reshape(1, m_pad)

    scale = jnp.asarray([inv_t], dtype=jnp.float32)

    grid = (n_pad // tn, m_pad // tm)
    kernel = functools.partial(_infonce_kernel, has_m_padding=has_m_padding)

    align_rows, uniform_rows = pl.pallas_call(
        kernel,
        out_shape=(
            jax.ShapeDtypeStruct((n_pad, 1), jnp.float32),
            jax.ShapeDtypeStruct((n_pad, 1), jnp.float32),
        ),
        grid_spec=pltpu.PrefetchScalarGridSpec(
            num_scalar_prefetch=0,
            grid=grid,
            in_specs=[
                pl.BlockSpec(memory_space=pltpu.SMEM),             # 1/temperature
                pl.BlockSpec((tn, 1), lambda i, j: (i, 0)),        # pos_dist rows
                pl.BlockSpec((tn, d_pad), lambda i, j: (i, 0)),    # ref tile
                pl.BlockSpec((d_pad, tm), lambda i, j: (0, j)),    # neg^T tile
                pl.BlockSpec((1, tm), lambda i, j: (0, j)),        # column bias
            ],
            out_specs=(
                pl.BlockSpec((tn, 1), lambda i, j: (i, 0)),
                pl.BlockSpec((tn, 1), lambda i, j: (i, 0)),
            ),
            scratch_shapes=[
                pltpu.VMEM((tn, d_pad), compute_dtype),  # scaled ref (per i block)
                pltpu.VMEM((tn, 1), jnp.float32),        # running row max
                pltpu.VMEM((tn, 1), jnp.float32),        # running sum-exp
            ],
        ),
        compiler_params=pltpu.CompilerParams(
            dimension_semantics=("parallel", "arbitrary"),
            vmem_limit_bytes=48 << 20),
    )(scale, pos_dist_p, ref_p, negT, col_bias)

    # Tiny final reductions (drop padded rows) done in plain JAX.
    align = jnp.mean(align_rows[:N, 0])
    uniform = jnp.mean(uniform_rows[:N, 0])
    return align + uniform, align, uniform


def _reference_jax(ref, pos, neg, temperature: float = 1.0):
    ref = ref.astype(jnp.float32)
    pos = pos.astype(jnp.float32)
    neg = neg.astype(jnp.float32)
    pos_dist = jnp.einsum("ni,ni->n", ref, pos) / temperature
    neg_dist = jnp.einsum("ni,mi->nm", ref, neg) / temperature
    c = jnp.max(neg_dist, axis=1, keepdims=True)
    pos_dist = pos_dist - jnp.squeeze(c, 1)
    neg_dist = neg_dist - c
    align = jnp.mean(-pos_dist)
    uniform = jnp.mean(jax.nn.logsumexp(neg_dist, axis=1))
    return align + uniform, align, uniform


if __name__ == "__main__":
    # ReferenceInfoNCE has no learned parameters (temperature is a hyperparameter).
    key = jax.random.PRNGKey(0)

    # --- test 1: the module's toy shapes (single grid point, masked M padding) ---
    N, M, D = 8, 16, 32
    temperature = 0.5
    k_ref, k_pos, k_neg = jax.random.split(key, 3)
    ref = jax.random.normal(k_ref, (N, D), dtype=jnp.float32)
    pos = jax.random.normal(k_pos, (N, D), dtype=jnp.float32)
    neg = jax.random.normal(k_neg, (M, D), dtype=jnp.float32)

    loss, align, uniform = infonce_pallas(ref, pos, neg, temperature)
    jax.block_until_ready((loss, align, uniform))
    exp_loss, exp_align, exp_uniform = _reference_jax(ref, pos, neg, temperature)
    assert jnp.allclose(loss, exp_loss, rtol=1e-5, atol=1e-5)
    assert jnp.allclose(align, exp_align, rtol=1e-5, atol=1e-5)
    assert jnp.allclose(uniform, exp_uniform, rtol=1e-5, atol=1e-5)

    # --- test 2: multi-tile grid, M padding/masking, online logsumexp ---
    N2, M2, D2 = 24, 300, 96
    temperature2 = 0.25
    k_ref2, k_pos2, k_neg2 = jax.random.split(jax.random.PRNGKey(1), 3)
    ref2 = jax.random.normal(k_ref2, (N2, D2), dtype=jnp.float32)
    pos2 = jax.random.normal(k_pos2, (N2, D2), dtype=jnp.float32)
    neg2 = jax.random.normal(k_neg2, (M2, D2), dtype=jnp.float32)

    loss2, align2, uniform2 = infonce_pallas(
        ref2, pos2, neg2, temperature2, block_n=8, block_m=128)
    jax.block_until_ready((loss2, align2, uniform2))
    exp_loss2, exp_align2, exp_uniform2 = _reference_jax(ref2, pos2, neg2, temperature2)
    assert jnp.allclose(loss2, exp_loss2, rtol=1e-4, atol=1e-4)
    assert jnp.allclose(align2, exp_align2, rtol=1e-4, atol=1e-4)
    assert jnp.allclose(uniform2, exp_uniform2, rtol=1e-4, atol=1e-4)

    # --- test 3: bf16 MXU operands, no-M-padding fast path, >=2 N tiles ---
    N3, M3, D3 = 64, 256, 128
    temperature3 = 1.0
    k_ref3, k_pos3, k_neg3 = jax.random.split(jax.random.PRNGKey(2), 3)
    ref3 = jax.random.normal(k_ref3, (N3, D3), dtype=jnp.float32)
    pos3 = jax.random.normal(k_pos3, (N3, D3), dtype=jnp.float32)
    neg3 = jax.random.normal(k_neg3, (M3, D3), dtype=jnp.float32)

    loss3, align3, uniform3 = infonce_pallas(
        ref3, pos3, neg3, temperature3, matmul_dtype=jnp.bfloat16)
    jax.block_until_ready((loss3, align3, uniform3))
    exp_loss3, exp_align3, exp_uniform3 = _reference_jax(ref3, pos3, neg3, temperature3)
    assert jnp.allclose(loss3, exp_loss3, rtol=5e-2, atol=5e-2)
    assert jnp.allclose(align3, exp_align3, rtol=5e-2, atol=5e-2)
    assert jnp.allclose(uniform3, exp_uniform3, rtol=5e-2, atol=5e-2)

    print("KERNEL_OK")
</pallas_src>

<mosaic_0001>
module attributes {stable_mosaic.version = 11 : i64} {
  func.func @_infonce_kernel(%arg0: i32, %arg1: i32, %arg2: memref<1xf32, #tpu.memory_space<smem>>, %arg3: memref<8x1xf32, #tpu.memory_space<vmem>>, %arg4: memref<8x128xf32, #tpu.memory_space<vmem>>, %arg5: memref<128x128xf32, #tpu.memory_space<vmem>>, %arg6: memref<1x128xf32, #tpu.memory_space<vmem>>, %arg7: memref<8x1xf32, #tpu.memory_space<vmem>>, %arg8: memref<8x1xf32, #tpu.memory_space<vmem>>, %arg9: memref<8x128xf32, #tpu.memory_space<vmem>>, %arg10: memref<8x1xf32, #tpu.memory_space<vmem>>, %arg11: memref<8x1xf32, #tpu.memory_space<vmem>>) attributes {dimension_semantics = [#tpu.dimension_semantics<parallel>, #tpu.dimension_semantics<arbitrary>], iteration_bounds = array<i64: 1, 1>, scalar_prefetch = 0 : i64, scratch_operands = 3 : i64, tpu.core_type = #tpu.core_type<tc>, window_params = [{transform_indices = @transform_0, window_bounds = array<i64: 1>}, {transform_indices = @transform_1, window_bounds = array<i64: 8, 1>}, {transform_indices = @transform_2, window_bounds = array<i64: 8, 128>}, {transform_indices = @transform_3, window_bounds = array<i64: 128, 128>}, {transform_indices = @transform_4, window_bounds = array<i64: 1, 128>}, {transform_indices = @transform_5, window_bounds = array<i64: 8, 1>}, {transform_indices = @transform_6, window_bounds = array<i64: 8, 1>}]} {
    %c0_i32 = arith.constant 0 : i32
    %0 = arith.cmpi eq, %arg1, %c0_i32 : i32
    %1 = arith.extui %0 : i1 to i32
    %c0_i32_0 = arith.constant 0 : i32
    %2 = arith.cmpi ne, %1, %c0_i32_0 : i32
    scf.if %2 {
      %cst_18 = arith.constant -1.000000e+30 : f32
      %28 = vector.broadcast %cst_18 : f32 to vector<8x1xf32>
      %c0_19 = arith.constant 0 : index
      %c0_20 = arith.constant 0 : index
      %29 = vector.load %arg10[%c0_19, %c0_20] : memref<8x1xf32, #tpu.memory_space<vmem>>, vector<8x1xf32>
      tpu.vector_store %arg10[%c0_19, %c0_20], %28 {strides = array<i32>} : memref<8x1xf32, #tpu.memory_space<vmem>>, vector<8x1xf32>,
      %cst_21 = arith.constant 0.000000e+00 : f32
      %30 = vector.broadcast %cst_21 : f32 to vector<8x1xf32>
      %c0_22 = arith.constant 0 : index
      %c0_23 = arith.constant 0 : index
      %31 = vector.load %arg11[%c0_22, %c0_23] : memref<8x1xf32, #tpu.memory_space<vmem>>, vector<8x1xf32>
      tpu.vector_store %arg11[%c0_22, %c0_23], %30 {strides = array<i32>} : memref<8x1xf32, #tpu.memory_space<vmem>>, vector<8x1xf32>,
      %c0_24 = arith.constant 0 : index
      %32 = memref.load %arg2[%c0_24] : memref<1xf32, #tpu.memory_space<smem>>
      %c0_25 = arith.constant 0 : index
      %c0_26 = arith.constant 0 : index
      %33 = vector.load %arg4[%c0_25, %c0_26] : memref<8x128xf32, #tpu.memory_space<vmem>>, vector<8x128xf32>
      %34 = vector.broadcast %32 : f32 to vector<8x128xf32>
      %35 = arith.mulf %33, %34 : vector<8x128xf32>
      %c0_27 = arith.constant 0 : index
      %c0_28 = arith.constant 0 : index
      %36 = vector.load %arg9[%c0_27, %c0_28] : memref<8x128xf32, #tpu.memory_space<vmem>>, vector<8x128xf32>
      tpu.vector_store %arg9[%c0_27, %c0_28], %35 {strides = array<i32>} : memref<8x128xf32, #tpu.memory_space<vmem>>, vector<8x128xf32>,
    } else {
    }
    %c0 = arith.constant 0 : index
    %c0_1 = arith.constant 0 : index
    %3 = vector.load %arg9[%c0, %c0_1] : memref<8x128xf32, #tpu.memory_space<vmem>>, vector<8x128xf32>
    %c0_2 = arith.constant 0 : index
    %c0_3 = arith.constant 0 : index
    %4 = vector.load %arg5[%c0_2, %c0_3] : memref<128x128xf32, #tpu.memory_space<vmem>>, vector<128x128xf32>
    %cst = arith.constant dense<0.000000e+00> : vector<8x128xf32>
    %5 = tpu.matmul %3, %4, %cst {dimension_numbers = #tpu.dot_dimension_numbers<[1], [0], [0], [1], [0, 0, 1, 1], [], []>} : vector<8x128xf32>, vector<128x128xf32>, vector<8x128xf32> -> vector<8x128xf32>
    %c0_4 = arith.constant 0 : index
    %c0_5 = arith.constant 0 : index
    %6 = vector.load %arg6[%c0_4, %c0_5] : memref<1x128xf32, #tpu.memory_space<vmem>>, vector<1x128xf32>
    %7 = vector.broadcast %6 : vector<1x128xf32> to vector<8x128xf32>
    %8 = arith.addf %5, %7 : vector<8x128xf32>
    %c0_6 = arith.constant 0 : index
    %c0_7 = arith.constant 0 : index
    %9 = vector.load %arg10[%c0_6, %c0_7] : memref<8x1xf32, #tpu.memory_space<vmem>>, vector<8x1xf32>
    %cst_8 = arith.constant dense<0xFF800000> : vector<8xf32>
    %10 = vector.multi_reduction <maximumf>, %8, %cst_8 [1] : vector<8x128xf32> to vector<8xf32>
    %11 = vector.shape_cast %10 : vector<8xf32> to vector<8x1xf32>
    %12 = arith.maximumf %9, %11 : vector<8x1xf32>
    %13 = arith.subf %9, %12 : vector<8x1xf32>
    %14 = math.exp %13 : vector<8x1xf32>
    %15 = vector.broadcast %12 : vector<8x1xf32> to vector<8x128xf32>
    %16 = arith.subf %8, %15 : vector<8x128xf32>
    %17 = math.exp %16 : vector<8x128xf32>
    %c0_9 = arith.constant 0 : index
    %c0_10 = arith.constant 0 : index
    %18 = vector.load %arg11[%c0_9, %c0_10] : memref<8x1xf32, #tpu.memory_space<vmem>>, vector<8x1xf32>
    %19 = arith.mulf %14, %18 : vector<8x1xf32>
    %cst_11 = arith.constant dense<0.000000e+00> : vector<8xf32>
    %20 = vector.multi_reduction <add>, %17, %cst_11 [1] : vector<8x128xf32> to vector<8xf32>
    %21 = vector.shape_cast %20 : vector<8xf32> to vector<8x1xf32>
    %22 = arith.addf %19, %21 : vector<8x1xf32>
    %c0_12 = arith.constant 0 : index
    %c0_13 = arith.constant 0 : index
    %23 = vector.load %arg11[%c0_12, %c0_13] : memref<8x1xf32, #tpu.memory_space<vmem>>, vector<8x1xf32>
    tpu.vector_store %arg11[%c0_12, %c0_13], %22 {strides = array<i32>} : memref<8x1xf32, #tpu.memory_space<vmem>>, vector<8x1xf32>,
    %c0_14 = arith.constant 0 : index
    %c0_15 = arith.constant 0 : index
    %24 = vector.load %arg10[%c0_14, %c0_15] : memref<8x1xf32, #tpu.memory_space<vmem>>, vector<8x1xf32>
    tpu.vector_store %arg10[%c0_14, %c0_15], %12 {strides = array<i32>} : memref<8x1xf32, #tpu.memory_space<vmem>>, vector<8x1xf32>,
    %c0_i32_16 = arith.constant 0 : i32
    %25 = arith.cmpi eq, %arg1, %c0_i32_16 : i32
    %26 = arith.extui %25 : i1 to i32
    %c0_i32_17 = arith.constant 0 : i32
    %27 = arith.cmpi ne, %26, %c0_i32_17 : i32
    scf.if %27 {
      %c0_18 = arith.constant 0 : index
      %c0_19 = arith.constant 0 : index
      %28 = vector.load %arg10[%c0_18, %c0_19] : memref<8x1xf32, #tpu.memory_space<vmem>>, vector<8x1xf32>
      %c0_20 = arith.constant 0 : index
      %c0_21 = arith.constant 0 : index
      %29 = vector.load %arg3[%c0_20, %c0_21] : memref<8x1xf32, #tpu.memory_space<vmem>>, vector<8x1xf32>
      %30 = arith.subf %28, %29 : vector<8x1xf32>
      %c0_22 = arith.constant 0 : index
      %c0_23 = arith.constant 0 : index
      %31 = vector.load %arg7[%c0_22, %c0_23] : memref<8x1xf32, #tpu.memory_space<vmem>>, vector<8x1xf32>
      tpu.vector_store %arg7[%c0_22, %c0_23], %30 {strides = array<i32>} : memref<8x1xf32, #tpu.memory_space<vmem>>, vector<8x1xf32>,
      %c0_24 = arith.constant 0 : index
      %c0_25 = arith.constant 0 : index
      %32 = vector.load %arg11[%c0_24, %c0_25] : memref<8x1xf32, #tpu.memory_space<vmem>>, vector<8x1xf32>
      %33 = math.log %32 : vector<8x1xf32>
      %c0_26 = arith.constant 0 : index
      %c0_27 = arith.constant 0 : index
      %34 = vector.load %arg8[%c0_26, %c0_27] : memref<8x1xf32, #tpu.memory_space<vmem>>, vector<8x1xf32>
      tpu.vector_store %arg8[%c0_26, %c0_27], %33 {strides = array<i32>} : memref<8x1xf32, #tpu.memory_space<vmem>>, vector<8x1xf32>,
    } else {
    }
    return
  }
  func.func @transform_0(%arg0: i32, %arg1: i32) -> i32 {
    %c0_i32 = arith.constant 0 : i32
    %c0_i32_0 = arith.constant 0 : i32
    return %c0_i32 : i32
  }
  func.func @transform_1(%arg0: i32, %arg1: i32) -> (i32, i32) {
    %c0_i32 = arith.constant 0 : i32
    %c0_i32_0 = arith.constant 0 : i32
    return %arg0, %c0_i32 : i32, i32
  }
  func.func @transform_2(%arg0: i32, %arg1: i32) -> (i32, i32) {
    %c0_i32 = arith.constant 0 : i32
    %c0_i32_0 = arith.constant 0 : i32
    return %arg0, %c0_i32 : i32, i32
  }
  func.func @transform_3(%arg0: i32, %arg1: i32) -> (i32, i32) {
    %c0_i32 = arith.constant 0 : i32
    %c0_i32_0 = arith.constant 0 : i32
    return %c0_i32, %arg1 : i32, i32
  }
  func.func @transform_4(%arg0: i32, %arg1: i32) -> (i32, i32) {
    %c0_i32 = arith.constant 0 : i32
    %c0_i32_0 = arith.constant 0 : i32
    return %c0_i32, %arg1 : i32, i32
  }
  func.func @transform_5(%arg0: i32, %arg1: i32) -> (i32, i32) {
    %c0_i32 = arith.constant 0 : i32
    %c0_i32_0 = arith.constant 0 : i32
    return %arg0, %c0_i32 : i32, i32
  }
  func.func @transform_6(%arg0: i32, %arg1: i32) -> (i32, i32) {
    %c0_i32 = arith.constant 0 : i32
    %c0_i32_0 = arith.constant 0 : i32
    return %arg0, %c0_i32 : i32, i32
  }
}

</mosaic_0001>

<bundles_post_ra>
// kernel: tpu_custom_call.1
= control target key start
LH: loop header
LB: loop body
LE: loop exit
PB: predicated region body
PF: predicated region fallthrough
CT: control target
= control target key end

     0   :  { %13 = vsyncpa [#allocation7], 0  ;;  %s275_s21 = smov [#allocation6]   ;;  %s344_s0 = inlined_call_operand.<no memory space> [shape: f32[1], index: 0, kind: input, shape index: {}]   ;;  %s345_s1 = inlined_call_operand.vmem [shape: f32[8,1], index: 1, kind: input, shape index: {}]   ;;  %s346_s2 = inlined_call_operand.vmem [shape: f32[8,128], index: 2, kind: input, shape index: {}]   ;;  %s347_s3 = inlined_call_operand.hbm [shape: f32[128,128], index: 3, kind: input, shape index: {}]   ;;  %s348_s4 = inlined_call_operand.vmem [shape: f32[1,128], index: 4, kind: input, shape index: {}]   ;;  %s349_s5 = inlined_call_operand.vmem [shape: f32[8,1], index: 5, kind: output, shape index: {0}]   ;;  %s350_s6 = inlined_call_operand.vmem [shape: f32[8,1], index: 6, kind: output, shape index: {1}]  }
   0x1   :  { %s25_s22 = sshll.u32 %s275_s21, 4  ;;  %s26_s22 = int_to_ptr.vmem [resolvable:$true] %s25_s22 }
   0x2   :  { %s261_s23 = scalar_lea.vmem %s26_s22, 2048  ;;  %p266_p1 = scmp.lt.s32.totalorder %s26_s22, %s26_s22 }
   0x3   :  { %p262_p0 = scmp.ne.s32.totalorder %s26_s22, %s261_s23  ;;  %p267_p2 = scmp.lt.s32.totalorder %s261_s23, %s261_s23 }
   0x5   :  { %p268_p3 = por %p267_p2, %p266_p1 }
   0x7   :  { %p269_p4 = pnand %p268_p3, %p262_p0 }
   0x9   :  { %272 = shalt.err (!%p269_p4)
}
   0xa   :  { %s276_s24 = smov 128   ;;  %s277_s25 = smov 8  }
   0xb   :  { %31 = dma.hbm_to_vmem [thread:$0]  %s347_s3, 2048, %s26_s22, [#allocation7], %s276_s24, %s276_s24, %s277_s25  }
   0xc   :  { %273 = dma.done.wait [#allocation7], 2048  }
   0xd   :  { %274 = vsyncadd [#allocation7], 4294965248  ;;  %v278_v0 = vmov 0.0   ;;  %vm279_vm0 = vmmov 0   ;;  %v65_v1 = vld [vmem:[#allocation6 + $0x78] sm:$0xff]  ;;  %v64_v2 = vld [vmem:[#allocation6 + $0x70] sm:$0xff]  ;;  %v46_v16 = vstv %s344_s0 }
   0xe   :  { %204 = vmatprep.subr.mxu0 %v278_v0  ;;  %236 = vmatprep.mubr.msk.f32.mxu0 %vm279_vm0, %v278_v0  ;;  %v63_v3 = vld [vmem:[#allocation6 + $0x68] sm:$0xff]  ;;  %v62_v4 = vld [vmem:[#allocation6 + $0x60] sm:$0xff]  ;;  %v61_v5 = vld [vmem:[#allocation6 + $0x58] sm:$0xff]  ;;  %vm41_vm1 = vcmask 7168   ;;  %v280_v20 = vmov -1e+30  }
   0xf   :  { %205 = vmatpush3.msra.mxu0 %v65_v1  ;;  %v60_v6 = vld [vmem:[#allocation6 + $0x50] sm:$0xff]  ;;  %v59_v7 = vld [vmem:[#allocation6 + $0x48] sm:$0xff]  ;;  %v58_v8 = vld [vmem:[#allocation6 + $0x40] sm:$0xff]  ;;  %42 = vst.msk [vmem:[#allocation3] sm:$0xff] %vm41_vm1, %v280_v20  ;;  %v281_v25 = vmov 0  }
  0x10   :  { %206 = vmatprep.subr.mxu0 %v278_v0  ;;  %v57_v9 = vld [vmem:[#allocation6 + $0x38] sm:$0xff]  ;;  %v56_v10 = vld [vmem:[#allocation6 + $0x30] sm:$0xff]  ;;  %v55_v11 = vld [vmem:[#allocation6 + $0x28] sm:$0xff]  ;;  %43 = vst.msk [vmem:[#allocation4] sm:$0xff] %vm41_vm1, %v278_v0  ;;  %246 = vset.pattern.permute.xlu0 %v281_v25 }
  0x11   :  { %207 = vmatpush3.msra.mxu0 %v64_v2  ;;  %v54_v12 = vld [vmem:[#allocation6 + $0x20] sm:$0xff]  ;;  %v53_v13 = vld [vmem:[#allocation6 + $0x18] sm:$0xff]  ;;  %v52_v14 = vld [vmem:[#allocation6 + $0x10] sm:$0xff] }
  0x12   :  { %208 = vmatprep.subr.mxu0 %v278_v0  ;;  %v45_v15 = vld [vmem:[%s346_s2] sm:$0xff]  ;;  %v51_v17 = vld [vmem:[#allocation6 + $0x8] sm:$0xff]  ;;  %v50_v18 = vld [vmem:[#allocation6] sm:$0xff] }
  0x13   :  { %209 = vmatpush3.msra.mxu0 %v63_v3  ;;  %v47_v19 = vmul.f32 %v46_v16, %v45_v15  ;;  %v186_v21 = vld [vmem:[%s348_s4] ss:$0 sm:$0xff] }
  0x14   :  { %210 = vmatprep.subr.mxu0 %v278_v0  ;;  %v170_v30 = vld [vmem:[%s345_s1] sm:$0xff] }
  0x15   :  { %211 = vmatpush3.msra.mxu0 %v62_v4 }
  0x16   :  { %212 = vmatprep.subr.mxu0 %v278_v0  ;;  %v143_v26 = vld [vmem:[#allocation3] sm:$0xff] }
  0x17   :  { %213 = vmatpush3.msra.mxu0 %v61_v5  ;;  %v158_v39 = vld [vmem:[#allocation4] sm:$0xff] }
  0x18   :  { %214 = vmatprep.subr.mxu0 %v278_v0 }
  0x19   :  { %215 = vmatpush3.msra.mxu0 %v60_v6 }
  0x1a   :  { %216 = vmatprep.subr.mxu0 %v278_v0 }
  0x1b   :  { %217 = vmatpush3.msra.mxu0 %v59_v7 }
  0x1c   :  { %218 = vmatprep.subr.mxu0 %v278_v0 }
  0x1d   :  { %219 = vmatpush3.msra.mxu0 %v58_v8 }
  0x1e   :  { %220 = vmatprep.subr.mxu0 %v278_v0 }
  0x1f   :  { %221 = vmatpush3.msra.mxu0 %v57_v9 }
  0x20   :  { %222 = vmatprep.subr.mxu0 %v278_v0 }
  0x21   :  { %223 = vmatpush3.msra.mxu0 %v56_v10 }
  0x22   :  { %224 = vmatprep.subr.mxu0 %v278_v0 }
  0x23   :  { %225 = vmatpush3.msra.mxu0 %v55_v11 }
  0x24   :  { %226 = vmatprep.subr.mxu0 %v278_v0 }
  0x25   :  { %227 = vmatpush3.msra.mxu0 %v54_v12 }
  0x26   :  { %228 = vmatprep.subr.mxu0 %v278_v0 }
  0x27   :  { %229 = vmatpush3.msra.mxu0 %v53_v13 }
  0x28   :  { %230 = vmatprep.subr.mxu0 %v278_v0 }
  0x29   :  { %231 = vmatpush3.msra.mxu0 %v52_v14 }
  0x2a   :  { %232 = vmatprep.subr.mxu0 %v278_v0 }
  0x2b   :  { %233 = vmatpush3.msra.mxu0 %v51_v17 }
  0x2c   :  { %234 = vmatprep.subr.mxu0 %v278_v0 }
  0x2d   :  { %235 = vmatpush3.msra.mxu0 %v50_v18 }
  0x2e   :  { %237 = vmatmul.mubr.f32.vlgmr.msra.gmra.mxu0 %v47_v19 }
  0xee   :  { %v139_v22 = vpop.f32.mrf.mxu0 }
  0xef   :  { %v140_v23 = vadd.f32 %v186_v21, %v139_v22 }
  0xf0   :  { %v238_v24 = vpop.f32.mrf.mxu0 }
  0xf1   :  { %144 = vmax.xlane.f32.xlu0 %v140_v23 }
 0x17a   :  { %v145_v27 = vpop.xlane.xlu0 %144 }
 0x17b   :  { %v146_v28 = vmax.f32 %v143_v26, %v145_v27 }
 0x17d   :  { %v147_v29 = vsub.f32 %v143_v26, %v146_v28  ;;  %165 = vst.msk [vmem:[#allocation3] sm:$0xff] %vm41_vm1, %v146_v28  ;;  %152 = vperm.xlu0 %246, %v146_v28  }
 0x17f   :  { %v148_v37 = vmul.f32 1.442695, %v147_v29 }
 0x184   :  { %v169_v31 = vld [vmem:[#allocation3] sm:$0xff] }
 0x185   :  { %v171_v32 = vsub.f32 %v169_v31, %v170_v30 }
 0x187   :  { %172 = vst.msk [vmem:[%s349_s5] sm:$0xff] %vm41_vm1, %v171_v32 }
 0x1f8   :  { %v153_v33 = vpop.permute.xlu0 %152 }
 0x1f9   :  { %v155_v34 = vsub.f32 %v140_v23, %v153_v33 }
 0x1fb   :  { %v156_v35 = vmul.f32 1.442695, %v155_v34 }
 0x1fd   :  { %247 = vpow2.f32 %v156_v35 }
 0x1fe   :  { %249 = vpow2.f32 %v148_v37 }
 0x20a   :  { %v248_v36 = vpop.eup %247 }
 0x20b   :  { %160 = vadd.xlane.f32.xlu1 %v248_v36  ;;  %v250_v38 = vpop.eup %249 }
 0x20c   :  { %v159_v40 = vmul.f32 %v250_v38, %v158_v39 }
 0x294   :  { %v161_v41 = vpop.xlane.xlu1 %160 }
 0x295   :  { %v162_v42 = vadd.f32 %v161_v41, %v159_v40 }
 0x297   :  { %164 = vst.msk [vmem:[#allocation4] sm:$0xff] %vm41_vm1, %v162_v42 }
 0x29e   :  { %v173_v43 = vld [vmem:[#allocation4] sm:$0xff] }
 0x29f   :  { %251 = vlog2.f32 %v173_v43 }
 0x2ac   :  { %v252_v44 = vpop.eup %251 }
 0x2ad   :  { %v175_v45 = vmul.f32 0.6931472, %v252_v44 }
 0x2af   :  { %176 = vst.msk [vmem:[%s350_s6] sm:$0xff] %vm41_vm1, %v175_v45 }
 0x2b0   :  { %185 = vsyncpa [#allocation7], 1 }

</bundles_post_ra>
